<compile_context>
chip_gen: v6e
topology: v6e:2x2x1
jax: 0.10.0
libtpu: 0.0.40
codegen_flags: <defaults>
</compile_context>

<pallas_src>
import functools

import jax
import jax.numpy as jnp
from jax.experimental import pallas as pl
from jax.experimental.pallas import tpu as pltpu


def set2set_kernel(x_ref, xt_ref, ebias_ref, w_ref, b_ref, qstar_ref,
                   *, B, D, steps):
    x = x_ref[...]          # (N_pad, D) f32, nodes on sublanes (readout matmul)
    x_t = xt_ref[...]       # (D, N_pad) f32, pre-transposed (score matmul)
    e_bias = ebias_ref[...]  # (B, N_pad) f32, 0 in-graph / -1e30 otherwise
    w = w_ref[...]          # (2D, 4D) = w_ih^T with w_hh^T folded into q-half
    b = b_ref[...]          # (1, 4D)  = b_ih + b_hh

    q_star = jnp.zeros((B, 2 * D), jnp.float32)   # [q, r], q == h
    c = jnp.zeros((B, D), jnp.float32)            # LSTM cell state

    for _ in range(steps):  # processing_step is small & static -> unrolled
        # --- single LSTM cell step (seq_len = 1), PyTorch gate order i,f,g,o ---
        # One fused (B,2D)@(2D,4D) MXU matmul replaces q@w_qh + r@w_r + add.
        gates = jnp.dot(q_star, w, preferred_element_type=jnp.float32) + b
        # Fused nonlinearities: one full-width sigmoid pass + one tanh on the
        # g lanes (the wasted sigmoid on those lanes rides free on the EUP).
        sig = jax.nn.sigmoid(gates)                              # (B, 4D)
        g_g = jnp.tanh(gates[:, 2 * D:3 * D])                    # (B, D)
        i_g = sig[:, 0 * D:1 * D]
        f_g = sig[:, 1 * D:2 * D]
        o_g = sig[:, 3 * D:4 * D]
        c = f_g * c + i_g * g_g
        q = o_g * jnp.tanh(c)                                    # q == h

        # --- attention scores, lane-major, MXU-native (B,D)@(D,N) ---
        e_bn = jnp.dot(q, x_t, preferred_element_type=jnp.float32) + e_bias

        # --- segmented softmax with deferred normalization ---
        e_max = jnp.max(e_bn, axis=1, keepdims=True)             # (B, 1)
        ex = jnp.exp(e_bn - e_max)                               # (B, N); masked -> 0
        denom = jnp.sum(ex, axis=1, keepdims=True)               # (B, 1)

        # --- unnormalized readout, then normalize on the small (B, D) tile ---
        r = jnp.dot(ex, x, preferred_element_type=jnp.float32)   # (B, D)
        r = r / (denom + 1e-16)

        q_star = jnp.concatenate([q, r], axis=-1)                # (B, 2D)

    qstar_ref[...] = q_star


def set2set_forward(x, batch_index, w_ih, w_hh, b_ih, b_hh, *,
                    batch_size, processing_step):
    N, D = x.shape
    B = batch_size
    B_pad = max(8, ((B + 7) // 8) * 8)            # sublane-aligned batch
    N_pad = max(128, ((N + 127) // 128) * 128)    # lane-aligned node count

    x_p = jnp.zeros((N_pad, D), jnp.float32).at[:N].set(x.astype(jnp.float32))
    x_t = jnp.transpose(x_p)                                     # (D, N_pad)

    # Additive score-bias mask: 0 where node n belongs to graph b, else -1e30.
    # Padded nodes get an out-of-range id so every row masks them out.
    bidx = jnp.full((N_pad,), B_pad, dtype=jnp.int32)
    bidx = bidx.at[:N].set(batch_index.astype(jnp.int32))
    seg_ids = jnp.arange(B_pad, dtype=jnp.int32)[:, None]        # (B_pad, 1)
    e_bias = jnp.where(seg_ids == bidx[None, :], 0.0, -1e30).astype(jnp.float32)

    # Stacked LSTM weight: gates = [q, r] @ w_ih^T + h @ w_hh^T + b with q == h
    #   => gates = q_star @ (w_ih^T with w_hh^T added to the q-half) + b.
    w_stack = jnp.transpose(w_ih).astype(jnp.float32)            # (2D, 4D)
    w_stack = w_stack.at[:D].add(jnp.transpose(w_hh).astype(jnp.float32))
    bias = (b_ih + b_hh).astype(jnp.float32).reshape(1, 4 * D)

    kernel = functools.partial(set2set_kernel, B=B_pad, D=D,
                               steps=processing_step)
    vmem = pl.BlockSpec(memory_space=pltpu.MemorySpace.VMEM)

    # Advisory cost estimate for the XLA scheduler.
    gate_flops = 2 * B_pad * (2 * D) * (4 * D)
    attn_flops = 2 * (2 * B_pad * N_pad * D)
    flops = processing_step * (gate_flops + attn_flops)
    transcendentals = processing_step * (B_pad * (6 * D) + B_pad * N_pad)
    bytes_accessed = 4 * (2 * N_pad * D + B_pad * N_pad
                          + 2 * D * 4 * D + 4 * D + B_pad * 2 * D)

    # Real resident set (f32, lane-padded to 128): x, x_t, e_bias, weights,
    # bias, output, plus a couple of (B, N) / (B, 4D) temporaries.  Sub-MiB at
    # these shapes; reserve ~4x with a 2 MiB floor instead of a 32 MiB floor so
    # surrounding XLA fusions keep their scoped VMEM.  Cap at 64 MiB (v7x).
    lane = lambda n: ((n + 127) // 128) * 128
    footprint = 4 * (N_pad * lane(D)            # x
                     + D * N_pad                # x_t
                     + B_pad * N_pad            # e_bias
                     + 2 * D * lane(4 * D)      # w_stack
                     + 8 * lane(4 * D)          # bias (sublane-padded)
                     + B_pad * lane(2 * D)      # output
                     + 3 * B_pad * N_pad        # live (B,N) temporaries
                     + 4 * B_pad * lane(4 * D))  # gate / state temporaries
    vmem_limit = int(min(64 * 1024 * 1024, max(2 * 1024 * 1024, 4 * footprint)))

    out = pl.pallas_call(
        kernel,
        out_shape=jax.ShapeDtypeStruct((B_pad, 2 * D), jnp.float32),
        in_specs=[vmem, vmem, vmem, vmem, vmem],
        out_specs=vmem,
        compiler_params=pltpu.CompilerParams(vmem_limit_bytes=vmem_limit),
        cost_estimate=pl.CostEstimate(flops=flops,
                                      transcendentals=transcendentals,
                                      bytes_accessed=bytes_accessed),
    )(x_p, x_t, e_bias, w_stack, bias)
    # Padded batch rows (B..B_pad-1) contain finite garbage by design (no mask
    # multiply in the kernel); slicing them off here is load-bearing.
    return out[:B]


def set2set_reference(x, batch_index, w_ih, w_hh, b_ih, b_hh, *,
                      batch_size, processing_step):
    """Pure-JAX reference matching the PyTorch Set2Set.forward semantics."""
    N, D = x.shape
    B = batch_size
    h = jnp.zeros((B, D), jnp.float32)
    c = jnp.zeros((B, D), jnp.float32)
    q_star = jnp.zeros((B, 2 * D), jnp.float32)
    bias = b_ih + b_hh
    for _ in range(processing_step):
        gates = q_star @ w_ih.T + h @ w_hh.T + bias
        i_g = jax.nn.sigmoid(gates[:, 0 * D:1 * D])
        f_g = jax.nn.sigmoid(gates[:, 1 * D:2 * D])
        g_g = jnp.tanh(gates[:, 2 * D:3 * D])
        o_g = jax.nn.sigmoid(gates[:, 3 * D:4 * D])
        c = f_g * c + i_g * g_g
        h = o_g * jnp.tanh(c)
        q = h
        e = jnp.sum(x * q[batch_index], axis=-1, keepdims=True)          # (N,1)
        e_max = jax.ops.segment_max(e, batch_index, num_segments=B)
        ex = jnp.exp(e - e_max[batch_index])
        denom = jax.ops.segment_sum(ex, batch_index, num_segments=B)
        a = ex / (denom[batch_index] + 1e-16)
        r = jax.ops.segment_sum(a * x, batch_index, num_segments=B)      # (B,D)
        q_star = jnp.concatenate([q, r], axis=-1)
    return q_star


if __name__ == "__main__":
    key = jax.random.PRNGKey(0)
    in_channel = 32          # D
    processing_step = 3
    num_nodes = 16           # N
    batch_size = 2           # B

    k_x, k1, k2, k3, k4 = jax.random.split(key, 5)
    x = jax.random.normal(k_x, (num_nodes, in_channel), dtype=jnp.float32)
    # nodes 0..8 -> graph 0, nodes 9..15 -> graph 1
    batch_index = jnp.array([0] * 9 + [1] * 7, dtype=jnp.int32)

    # Deterministic LSTM params, PyTorch-style uniform(-1/sqrt(H), 1/sqrt(H)).
    D = in_channel
    bound = 1.0 / (D ** 0.5)
    w_ih = jax.random.uniform(k1, (4 * D, 2 * D), minval=-bound, maxval=bound,
                              dtype=jnp.float32)
    w_hh = jax.random.uniform(k2, (4 * D, D), minval=-bound, maxval=bound,
                              dtype=jnp.float32)
    b_ih = jax.random.uniform(k3, (4 * D,), minval=-bound, maxval=bound,
                              dtype=jnp.float32)
    b_hh = jax.random.uniform(k4, (4 * D,), minval=-bound, maxval=bound,
                              dtype=jnp.float32)

    out = set2set_forward(x, batch_index, w_ih, w_hh, b_ih, b_hh,
                          batch_size=batch_size,
                          processing_step=processing_step)
    out = jax.block_until_ready(out)

    ref = set2set_reference(x, batch_index, w_ih, w_hh, b_ih, b_hh,
                            batch_size=batch_size,
                            processing_step=processing_step)
    assert out.shape == (batch_size, 2 * in_channel)
    assert jnp.allclose(out, ref, atol=1e-5, rtol=1e-5), (out, ref)
    print("KERNEL_OK")
</pallas_src>

<mosaic_0001>
module attributes {stable_mosaic.version = 11 : i64} {
  func.func @set2set_kernel(%arg0: memref<128x32xf32, #tpu.memory_space<vmem>>, %arg1: memref<32x128xf32, #tpu.memory_space<vmem>>, %arg2: memref<8x128xf32, #tpu.memory_space<vmem>>, %arg3: memref<64x128xf32, #tpu.memory_space<vmem>>, %arg4: memref<1x128xf32, #tpu.memory_space<vmem>>, %arg5: memref<8x64xf32, #tpu.memory_space<vmem>>) attributes {dimension_semantics = [], scalar_prefetch = 0 : i64, scratch_operands = 0 : i64, tpu.core_type = #tpu.core_type<tc>} {
    %c0 = arith.constant 0 : index
    %c0_0 = arith.constant 0 : index
    %0 = vector.load %arg0[%c0, %c0_0] : memref<128x32xf32, #tpu.memory_space<vmem>>, vector<128x32xf32>
    %c0_1 = arith.constant 0 : index
    %c0_2 = arith.constant 0 : index
    %1 = vector.load %arg1[%c0_1, %c0_2] : memref<32x128xf32, #tpu.memory_space<vmem>>, vector<32x128xf32>
    %c0_3 = arith.constant 0 : index
    %c0_4 = arith.constant 0 : index
    %2 = vector.load %arg2[%c0_3, %c0_4] : memref<8x128xf32, #tpu.memory_space<vmem>>, vector<8x128xf32>
    %c0_5 = arith.constant 0 : index
    %c0_6 = arith.constant 0 : index
    %3 = vector.load %arg3[%c0_5, %c0_6] : memref<64x128xf32, #tpu.memory_space<vmem>>, vector<64x128xf32>
    %c0_7 = arith.constant 0 : index
    %c0_8 = arith.constant 0 : index
    %4 = vector.load %arg4[%c0_7, %c0_8] : memref<1x128xf32, #tpu.memory_space<vmem>>, vector<1x128xf32>
    %cst = arith.constant 0.000000e+00 : f32
    %5 = vector.broadcast %cst : f32 to vector<8x64xf32>
    %cst_9 = arith.constant 0.000000e+00 : f32
    %6 = vector.broadcast %cst_9 : f32 to vector<8x32xf32>
    %cst_10 = arith.constant dense<0.000000e+00> : vector<8x128xf32>
    %7 = tpu.matmul %5, %3, %cst_10 {dimension_numbers = #tpu.dot_dimension_numbers<[1], [0], [0], [1], [0, 0, 1, 1], [], []>} : vector<8x64xf32>, vector<64x128xf32>, vector<8x128xf32> -> vector<8x128xf32>
    %8 = vector.broadcast %4 : vector<1x128xf32> to vector<8x128xf32>
    %9 = arith.addf %7, %8 : vector<8x128xf32>
    %10 = arith.negf %9 : vector<8x128xf32>
    %11 = math.exp %10 : vector<8x128xf32>
    %cst_11 = arith.constant 1.000000e+00 : f32
    %12 = vector.broadcast %cst_11 : f32 to vector<8x128xf32>
    %13 = arith.addf %12, %11 : vector<8x128xf32>
    %14 = arith.divf %12, %13 : vector<8x128xf32>
    %15 = vector.extract_strided_slice %9 {offsets = [0, 64], sizes = [8, 32], strides = [1, 1]} : vector<8x128xf32> to vector<8x32xf32>
    %16 = math.tanh %15 : vector<8x32xf32>
    %17 = vector.extract_strided_slice %14 {offsets = [0, 0], sizes = [8, 32], strides = [1, 1]} : vector<8x128xf32> to vector<8x32xf32>
    %18 = vector.extract_strided_slice %14 {offsets = [0, 32], sizes = [8, 32], strides = [1, 1]} : vector<8x128xf32> to vector<8x32xf32>
    %19 = vector.extract_strided_slice %14 {offsets = [0, 96], sizes = [8, 32], strides = [1, 1]} : vector<8x128xf32> to vector<8x32xf32>
    %20 = arith.mulf %18, %6 : vector<8x32xf32>
    %21 = arith.mulf %17, %16 : vector<8x32xf32>
    %22 = arith.addf %20, %21 : vector<8x32xf32>
    %23 = math.tanh %22 : vector<8x32xf32>
    %24 = arith.mulf %19, %23 : vector<8x32xf32>
    %cst_12 = arith.constant dense<0.000000e+00> : vector<8x128xf32>
    %25 = tpu.matmul %24, %1, %cst_12 {dimension_numbers = #tpu.dot_dimension_numbers<[1], [0], [0], [1], [0, 0, 1, 1], [], []>} : vector<8x32xf32>, vector<32x128xf32>, vector<8x128xf32> -> vector<8x128xf32>
    %26 = arith.addf %25, %2 : vector<8x128xf32>
    %cst_13 = arith.constant dense<0xFF800000> : vector<8xf32>
    %27 = vector.multi_reduction <maximumf>, %26, %cst_13 [1] : vector<8x128xf32> to vector<8xf32>
    %28 = vector.shape_cast %27 : vector<8xf32> to vector<8x1xf32>
    %29 = vector.broadcast %28 : vector<8x1xf32> to vector<8x128xf32>
    %30 = arith.subf %26, %29 : vector<8x128xf32>
    %31 = math.exp %30 : vector<8x128xf32>
    %cst_14 = arith.constant dense<0.000000e+00> : vector<8xf32>
    %32 = vector.multi_reduction <add>, %31, %cst_14 [1] : vector<8x128xf32> to vector<8xf32>
    %33 = vector.shape_cast %32 : vector<8xf32> to vector<8x1xf32>
    %cst_15 = arith.constant dense<0.000000e+00> : vector<8x32xf32>
    %34 = tpu.matmul %31, %0, %cst_15 {dimension_numbers = #tpu.dot_dimension_numbers<[1], [0], [0], [1], [0, 0, 1, 1], [], []>} : vector<8x128xf32>, vector<128x32xf32>, vector<8x32xf32> -> vector<8x32xf32>
    %cst_16 = arith.constant 1.000000e-16 : f32
    %35 = vector.broadcast %cst_16 : f32 to vector<8x1xf32>
    %36 = arith.addf %33, %35 : vector<8x1xf32>
    %37 = vector.broadcast %36 : vector<8x1xf32> to vector<8x32xf32>
    %38 = arith.divf %34, %37 : vector<8x32xf32>
    %39 = tpu.concatenate %24, %38 in 1 : vector<8x32xf32>, vector<8x32xf32> -> vector<8x64xf32>
    %cst_17 = arith.constant dense<0.000000e+00> : vector<8x128xf32>
    %40 = tpu.matmul %39, %3, %cst_17 {dimension_numbers = #tpu.dot_dimension_numbers<[1], [0], [0], [1], [0, 0, 1, 1], [], []>} : vector<8x64xf32>, vector<64x128xf32>, vector<8x128xf32> -> vector<8x128xf32>
    %41 = vector.broadcast %4 : vector<1x128xf32> to vector<8x128xf32>
    %42 = arith.addf %40, %41 : vector<8x128xf32>
    %43 = arith.negf %42 : vector<8x128xf32>
    %44 = math.exp %43 : vector<8x128xf32>
    %cst_18 = arith.constant 1.000000e+00 : f32
    %45 = vector.broadcast %cst_18 : f32 to vector<8x128xf32>
    %46 = arith.addf %45, %44 : vector<8x128xf32>
    %47 = arith.divf %45, %46 : vector<8x128xf32>
    %48 = vector.extract_strided_slice %42 {offsets = [0, 64], sizes = [8, 32], strides = [1, 1]} : vector<8x128xf32> to vector<8x32xf32>
    %49 = math.tanh %48 : vector<8x32xf32>
    %50 = vector.extract_strided_slice %47 {offsets = [0, 0], sizes = [8, 32], strides = [1, 1]} : vector<8x128xf32> to vector<8x32xf32>
    %51 = vector.extract_strided_slice %47 {offsets = [0, 32], sizes = [8, 32], strides = [1, 1]} : vector<8x128xf32> to vector<8x32xf32>
    %52 = vector.extract_strided_slice %47 {offsets = [0, 96], sizes = [8, 32], strides = [1, 1]} : vector<8x128xf32> to vector<8x32xf32>
    %53 = arith.mulf %51, %22 : vector<8x32xf32>
    %54 = arith.mulf %50, %49 : vector<8x32xf32>
    %55 = arith.addf %53, %54 : vector<8x32xf32>
    %56 = math.tanh %55 : vector<8x32xf32>
    %57 = arith.mulf %52, %56 : vector<8x32xf32>
    %cst_19 = arith.constant dense<0.000000e+00> : vector<8x128xf32>
    %58 = tpu.matmul %57, %1, %cst_19 {dimension_numbers = #tpu.dot_dimension_numbers<[1], [0], [0], [1], [0, 0, 1, 1], [], []>} : vector<8x32xf32>, vector<32x128xf32>, vector<8x128xf32> -> vector<8x128xf32>
    %59 = arith.addf %58, %2 : vector<8x128xf32>
    %cst_20 = arith.constant dense<0xFF800000> : vector<8xf32>
    %60 = vector.multi_reduction <maximumf>, %59, %cst_20 [1] : vector<8x128xf32> to vector<8xf32>
    %61 = vector.shape_cast %60 : vector<8xf32> to vector<8x1xf32>
    %62 = vector.broadcast %61 : vector<8x1xf32> to vector<8x128xf32>
    %63 = arith.subf %59, %62 : vector<8x128xf32>
    %64 = math.exp %63 : vector<8x128xf32>
    %cst_21 = arith.constant dense<0.000000e+00> : vector<8xf32>
    %65 = vector.multi_reduction <add>, %64, %cst_21 [1] : vector<8x128xf32> to vector<8xf32>
    %66 = vector.shape_cast %65 : vector<8xf32> to vector<8x1xf32>
    %cst_22 = arith.constant dense<0.000000e+00> : vector<8x32xf32>
    %67 = tpu.matmul %64, %0, %cst_22 {dimension_numbers = #tpu.dot_dimension_numbers<[1], [0], [0], [1], [0, 0, 1, 1], [], []>} : vector<8x128xf32>, vector<128x32xf32>, vector<8x32xf32> -> vector<8x32xf32>
    %cst_23 = arith.constant 1.000000e-16 : f32
    %68 = vector.broadcast %cst_23 : f32 to vector<8x1xf32>
    %69 = arith.addf %66, %68 : vector<8x1xf32>
    %70 = vector.broadcast %69 : vector<8x1xf32> to vector<8x32xf32>
    %71 = arith.divf %67, %70 : vector<8x32xf32>
    %72 = tpu.concatenate %57, %71 in 1 : vector<8x32xf32>, vector<8x32xf32> -> vector<8x64xf32>
    %cst_24 = arith.constant dense<0.000000e+00> : vector<8x128xf32>
    %73 = tpu.matmul %72, %3, %cst_24 {dimension_numbers = #tpu.dot_dimension_numbers<[1], [0], [0], [1], [0, 0, 1, 1], [], []>} : vector<8x64xf32>, vector<64x128xf32>, vector<8x128xf32> -> vector<8x128xf32>
    %74 = vector.broadcast %4 : vector<1x128xf32> to vector<8x128xf32>
    %75 = arith.addf %73, %74 : vector<8x128xf32>
    %76 = arith.negf %75 : vector<8x128xf32>
    %77 = math.exp %76 : vector<8x128xf32>
    %cst_25 = arith.constant 1.000000e+00 : f32
    %78 = vector.broadcast %cst_25 : f32 to vector<8x128xf32>
    %79 = arith.addf %78, %77 : vector<8x128xf32>
    %80 = arith.divf %78, %79 : vector<8x128xf32>
    %81 = vector.extract_strided_slice %75 {offsets = [0, 64], sizes = [8, 32], strides = [1, 1]} : vector<8x128xf32> to vector<8x32xf32>
    %82 = math.tanh %81 : vector<8x32xf32>
    %83 = vector.extract_strided_slice %80 {offsets = [0, 0], sizes = [8, 32], strides = [1, 1]} : vector<8x128xf32> to vector<8x32xf32>
    %84 = vector.extract_strided_slice %80 {offsets = [0, 32], sizes = [8, 32], strides = [1, 1]} : vector<8x128xf32> to vector<8x32xf32>
    %85 = vector.extract_strided_slice %80 {offsets = [0, 96], sizes = [8, 32], strides = [1, 1]} : vector<8x128xf32> to vector<8x32xf32>
    %86 = arith.mulf %84, %55 : vector<8x32xf32>
    %87 = arith.mulf %83, %82 : vector<8x32xf32>
    %88 = arith.addf %86, %87 : vector<8x32xf32>
    %89 = math.tanh %88 : vector<8x32xf32>
    %90 = arith.mulf %85, %89 : vector<8x32xf32>
    %cst_26 = arith.constant dense<0.000000e+00> : vector<8x128xf32>
    %91 = tpu.matmul %90, %1, %cst_26 {dimension_numbers = #tpu.dot_dimension_numbers<[1], [0], [0], [1], [0, 0, 1, 1], [], []>} : vector<8x32xf32>, vector<32x128xf32>, vector<8x128xf32> -> vector<8x128xf32>
    %92 = arith.addf %91, %2 : vector<8x128xf32>
    %cst_27 = arith.constant dense<0xFF800000> : vector<8xf32>
    %93 = vector.multi_reduction <maximumf>, %92, %cst_27 [1] : vector<8x128xf32> to vector<8xf32>
    %94 = vector.shape_cast %93 : vector<8xf32> to vector<8x1xf32>
    %95 = vector.broadcast %94 : vector<8x1xf32> to vector<8x128xf32>
    %96 = arith.subf %92, %95 : vector<8x128xf32>
    %97 = math.exp %96 : vector<8x128xf32>
    %cst_28 = arith.constant dense<0.000000e+00> : vector<8xf32>
    %98 = vector.multi_reduction <add>, %97, %cst_28 [1] : vector<8x128xf32> to vector<8xf32>
    %99 = vector.shape_cast %98 : vector<8xf32> to vector<8x1xf32>
    %cst_29 = arith.constant dense<0.000000e+00> : vector<8x32xf32>
    %100 = tpu.matmul %97, %0, %cst_29 {dimension_numbers = #tpu.dot_dimension_numbers<[1], [0], [0], [1], [0, 0, 1, 1], [], []>} : vector<8x128xf32>, vector<128x32xf32>, vector<8x32xf32> -> vector<8x32xf32>
    %cst_30 = arith.constant 1.000000e-16 : f32
    %101 = vector.broadcast %cst_30 : f32 to vector<8x1xf32>
    %102 = arith.addf %99, %101 : vector<8x1xf32>
    %103 = vector.broadcast %102 : vector<8x1xf32> to vector<8x32xf32>
    %104 = arith.divf %100, %103 : vector<8x32xf32>
    %105 = tpu.concatenate %90, %104 in 1 : vector<8x32xf32>, vector<8x32xf32> -> vector<8x64xf32>
    %c0_31 = arith.constant 0 : index
    %c0_32 = arith.constant 0 : index
    %106 = vector.load %arg5[%c0_31, %c0_32] : memref<8x64xf32, #tpu.memory_space<vmem>>, vector<8x64xf32>
    tpu.vector_store %arg5[%c0_31, %c0_32], %105 {strides = array<i32>} : memref<8x64xf32, #tpu.memory_space<vmem>>, vector<8x64xf32>,
    return
  }
}

</mosaic_0001>

<bundles_post_ra>
// kernel: tpu_custom_call.1
= control target key start
LH: loop header
LB: loop body
LE: loop exit
PB: predicated region body
PF: predicated region fallthrough
CT: control target
= control target key end

     0   :  { %v1208_v1 = vmov 0.0   ;;  %vm1209_vm0 = vmmov 0   ;;  %s1625_s0 = inlined_call_operand.vmem [shape: f32[128,32], index: 0, kind: input, shape index: {}]   ;;  %s1626_s1 = inlined_call_operand.vmem [shape: f32[32,128], index: 1, kind: input, shape index: {}]   ;;  %s1627_s2 = inlined_call_operand.vmem [shape: f32[8,128], index: 2, kind: input, shape index: {}]   ;;  %s1628_s3 = inlined_call_operand.vmem [shape: f32[64,128], index: 3, kind: input, shape index: {}]   ;;  %s1629_s4 = inlined_call_operand.vmem [shape: f32[1,128], index: 4, kind: input, shape index: {}]   ;;  %s1630_s5 = inlined_call_operand.hbm [shape: f32[8,64], index: 5, kind: output, shape index: {}]  }
   0x1   :  { %v1246_v0 = vld [vmem:[%s1628_s3 + $0x38] sm:$0xff]  ;;  %950 = vmatprep.subr.mxu0 %v1208_v1  ;;  %v1252_v2 = vld [vmem:[%s1628_s3 + $0x30] sm:$0xff]  ;;  %966 = vmatprep.mubr.msk.f32.mxu0 %vm1209_vm0, %v1208_v1  ;;  %v1262_v3 = vld [vmem:[%s1628_s3 + $0x28] sm:$0xff] }
   0x2   :  { %951 = vmatpush3.msra.mxu0 %v1246_v0  ;;  %980 = vmatprep.subr.mxu1 %v1208_v1 }
   0x3   :  { %952 = vmatprep.subr.mxu0 %v1208_v1  ;;  %1012 = vmatprep.mubr.msk.f32.mxu1 %vm1209_vm0, %v1208_v1 }
   0x4   :  { %10 = vsyncpa [#allocation3], 0  ;;  %953 = vmatpush3.msra.mxu0 %v1252_v2  ;;  %v1271_v4 = vld [vmem:[%s1628_s3 + $0x20] sm:$0xff]  ;;  %v1278_v5 = vld [vmem:[%s1628_s3 + $0x18] sm:$0xff]  ;;  %s1211_s11 = smov 32   ;;  %vm158_vm1 = vcmask 261120  }
   0x5   :  { %954 = vmatprep.subr.mxu0 %v1208_v1  ;;  %v1285_v6 = vld [vmem:[%s1628_s3 + $0x10] sm:$0xff]  ;;  %v1292_v7 = vld [vmem:[%s1628_s3 + $0x8] sm:$0xff]  ;;  %v1299_v8 = vld [vmem:[%s1628_s3] sm:$0xff]  ;;  %s1210_s3 = smov 64   ;;  %vm57_vm2 = vcmask 523264  }
   0x6   :  { %955 = vmatpush3.msra.mxu0 %v1262_v3  ;;  %v1311_v9 = vld [vmem:[%s1629_s4] ss:$0 sm:$0xff]  ;;  %v1322_v23 = vld [vmem:[%s1626_s1 + $0x18] sm:$0xff]  ;;  %v1327_v24 = vld [vmem:[%s1626_s1 + $0x10] sm:$0xff] }
   0x7   :  { %956 = vmatprep.subr.mxu0 %v1208_v1  ;;  %v1334_v25 = vld [vmem:[%s1626_s1 + $0x8] sm:$0xff]  ;;  %v1344_v27 = vld [vmem:[%s1626_s1] sm:$0xff]  ;;  %v1374_v31 = vld [vmem:[%s1625_s0 + $0x78] sm:$0xff] }
   0x8   :  { %957 = vmatpush3.msra.mxu0 %v1271_v4  ;;  %v1379_v32 = vld [vmem:[%s1625_s0 + $0x70] sm:$0xff]  ;;  %981 = vmatpush3.msra.mxu1 %v1374_v31  ;;  %v1386_v33 = vld [vmem:[%s1625_s0 + $0x68] sm:$0xff]  ;;  %v1393_v34 = vld [vmem:[%s1625_s0 + $0x60] sm:$0xff] }
   0x9   :  { %958 = vmatprep.subr.mxu0 %v1208_v1  ;;  %982 = vmatprep.subr.mxu1 %v1208_v1  ;;  %v1400_v35 = vld [vmem:[%s1625_s0 + $0x58] sm:$0xff]  ;;  %v1407_v36 = vld [vmem:[%s1625_s0 + $0x50] sm:$0xff]  ;;  %v1416_v37 = vld [vmem:[%s1627_s2] sm:$0xff] }
   0xa   :  { %959 = vmatpush3.msra.mxu0 %v1278_v5  ;;  %983 = vmatpush3.msra.mxu1 %v1379_v32  ;;  %v1422_v41 = vld [vmem:[%s1625_s0 + $0x48] sm:$0xff]  ;;  %v1429_v42 = vld [vmem:[%s1625_s0 + $0x40] sm:$0xff]  ;;  %v1436_v43 = vld [vmem:[%s1625_s0 + $0x38] sm:$0xff] }
   0xb   :  { %960 = vmatprep.subr.mxu0 %v1208_v1  ;;  %984 = vmatprep.subr.mxu1 %v1208_v1  ;;  %v1443_v44 = vld [vmem:[%s1625_s0 + $0x30] sm:$0xff]  ;;  %v1448_v45 = vld [vmem:[%s1625_s0 + $0x28] sm:$0xff]  ;;  %v1455_v46 = vld [vmem:[%s1625_s0 + $0x20] sm:$0xff] }
   0xc   :  { %961 = vmatpush3.msra.mxu0 %v1285_v6  ;;  %985 = vmatpush3.msra.mxu1 %v1386_v33  ;;  %v1462_v47 = vld [vmem:[%s1625_s0 + $0x18] sm:$0xff]  ;;  %v1469_v48 = vld [vmem:[%s1625_s0 + $0x10] sm:$0xff]  ;;  %v1476_v49 = vld [vmem:[%s1625_s0 + $0x8] sm:$0xff] }
   0xd   :  { %962 = vmatprep.subr.mxu0 %v1208_v1  ;;  %986 = vmatprep.subr.mxu1 %v1208_v1  ;;  %v1483_v50 = vld [vmem:[%s1625_s0] sm:$0xff]  ;;  %s1212_s0 = smov [#allocation2]  }
   0xe   :  { %963 = vmatpush3.msra.mxu0 %v1292_v7  ;;  %987 = vmatpush3.msra.mxu1 %v1393_v34 }
   0xf   :  { %964 = vmatprep.subr.mxu0 %v1208_v1  ;;  %988 = vmatprep.subr.mxu1 %v1208_v1 }
  0x10   :  { %965 = vmatpush3.msra.mxu0 %v1299_v8  ;;  %989 = vmatpush3.msra.mxu1 %v1400_v35 }
  0x11   :  { %967 = vmatmul.mubr.f32.vlgmr.msra.gmra.mxu0 %v1208_v1  ;;  %969 = vmatprep.subr.mxu0 %v1208_v1 }
  0x12   :  { %977 = vmatprep.mubr.msk.f32.mxu0 %vm1209_vm0, %v1208_v1  ;;  %970 = vmatpush3.msra.mxu0 %v1322_v23 }
  0x13   :  { %971 = vmatprep.subr.mxu0 %v1208_v1  ;;  %990 = vmatprep.subr.mxu1 %v1208_v1 }
  0x14   :  { %972 = vmatpush3.msra.mxu0 %v1327_v24  ;;  %991 = vmatpush3.msra.mxu1 %v1407_v36 }
  0x15   :  { %973 = vmatprep.subr.mxu0 %v1208_v1  ;;  %992 = vmatprep.subr.mxu1 %v1208_v1 }
  0x16   :  { %974 = vmatpush3.msra.mxu0 %v1334_v25  ;;  %993 = vmatpush3.msra.mxu1 %v1422_v41 }
  0x17   :  { %975 = vmatprep.subr.mxu0 %v1208_v1  ;;  %994 = vmatprep.subr.mxu1 %v1208_v1 }
  0x18   :  { %976 = vmatpush3.msra.mxu0 %v1344_v27  ;;  %995 = vmatpush3.msra.mxu1 %v1429_v42 }
  0x19   :  { %1015 = vmatprep.subr.mxu0 %v1208_v1  ;;  %996 = vmatprep.subr.mxu1 %v1208_v1 }
  0x1a   :  { %997 = vmatpush3.msra.mxu1 %v1436_v43 }
  0x1b   :  { %998 = vmatprep.subr.mxu1 %v1208_v1 }
  0x1c   :  { %999 = vmatpush3.msra.mxu1 %v1443_v44 }
  0x1d   :  { %1000 = vmatprep.subr.mxu1 %v1208_v1 }
  0x1e   :  { %1001 = vmatpush3.msra.mxu1 %v1448_v45 }
  0x1f   :  { %1002 = vmatprep.subr.mxu1 %v1208_v1 }
  0x20   :  { %1003 = vmatpush3.msra.mxu1 %v1455_v46 }
  0x21   :  { %1004 = vmatprep.subr.mxu1 %v1208_v1 }
  0x22   :  { %1005 = vmatpush3.msra.mxu1 %v1462_v47 }
  0x23   :  { %1006 = vmatprep.subr.mxu1 %v1208_v1 }
  0x24   :  { %1007 = vmatpush3.msra.mxu1 %v1469_v48 }
  0x25   :  { %1008 = vmatprep.subr.mxu1 %v1208_v1 }
  0x26   :  { %1009 = vmatpush3.msra.mxu1 %v1476_v49 }
  0x27   :  { %1010 = vmatprep.subr.mxu1 %v1208_v1 }
  0x28   :  { %1011 = vmatpush3.msra.mxu1 %v1483_v50 }
  0x29   :  { %1080 = vmatprep.subr.mxu1 %v1208_v1 }
  0xd1   :  { %v127_v10 = vpop.f32.mrf.mxu0 }
  0xd2   :  { %v128_v11 = vadd.f32 %v1311_v9, %v127_v10 }
  0xd3   :  { %v968_v12 = vpop.f32.mrf.mxu0 }
  0xd4   :  { %1150 = vtanh.f32 %v128_v11  ;;  %v849_v14 = vmul.f32 -1.442695, %v128_v11 }
  0xd6   :  { %1152 = vpow2.f32 %v849_v14 }
  0xe1   :  { %v1151_v13 = vpop.eup %1150 }
  0xe2   :  { %140 = vrot.lane.b32.xlu0 %v1151_v13, %s1210_s3 }
  0xe3   :  { %v1153_v15 = vpop.eup %1152 }
  0xe4   :  { %v134_v16 = vadd.f32 1.0, %v1153_v15 }
  0xe6   :  { %1154 = vrcp.f32 %v134_v16 }
  0xf3   :  { %v1155_v17 = vpop.eup %1154 }
  0xf4   :  { %v138_v20 = vmul.f32 0.0, %v1155_v17 }
 0x154   :  { %v141_v18 = vpop.permute.xlu0 %140 }
 0x155   :  { %v143_v19 = vmul.f32 %v1155_v17, %v141_v18 }
 0x157   :  { %145 = vrot.lane.b32.xlu0 %v143_v19, %s1211_s11 }
 0x1c9   :  { %v146_v21 = vpop.permute.xlu0 %145 }
 0x1ca   :  { %v1316_v22 = vadd.f32 %v146_v21, %v138_v20 }
 0x1cc   :  { %1156 = vtanh.f32 %v1316_v22 }
 0x1d9   :  { %v1157_v26 = vpop.eup %1156 }
 0x1da   :  { %151 = vrot.lane.b32.xlu1 %v1157_v26, %s1210_s3 }
 0x24c   :  { %v152_v28 = vpop.permute.xlu1 %151 }
 0x24d   :  { %v154_v29 = vmul.f32 %v1155_v17, %v152_v28 }
 0x24f   :  { %156 = vrot.lane.b32.xlu1 %v154_v29, %s1211_s11 }
 0x2c1   :  { %v1349_v30 = vpop.permute.xlu1 %156 }
 0x2c2   :  { %978 = vmatmul.mubr.msk.f32.vlgmr.msra.gmra.mxu0 %vm158_vm1, %v1349_v30 }
 0x2c3   :  { %1016 = vmatpush3.msra.mxu0 %v1246_v0  ;;  %1031 = vmatprep.mubr.msk.f32.mxu0 %vm1209_vm0, %v1208_v1 }
 0x2c4   :  { %1017 = vmatprep.subr.mxu0 %v1208_v1 }
 0x2c5   :  { %1018 = vmatpush3.msra.mxu0 %v1252_v2 }
 0x2c6   :  { %1019 = vmatprep.subr.mxu0 %v1208_v1 }
 0x2c7   :  { %1020 = vmatpush3.msra.mxu0 %v1262_v3 }
 0x2c8   :  { %1021 = vmatprep.subr.mxu0 %v1208_v1 }
 0x2c9   :  { %1022 = vmatpush3.msra.mxu0 %v1271_v4 }
 0x2ca   :  { %1023 = vmatprep.subr.mxu0 %v1208_v1 }
 0x2cb   :  { %1024 = vmatpush3.msra.mxu0 %v1278_v5 }
 0x2cc   :  { %1025 = vmatprep.subr.mxu0 %v1208_v1 }
 0x2cd   :  { %1026 = vmatpush3.msra.mxu0 %v1285_v6 }
 0x2ce   :  { %1027 = vmatprep.subr.mxu0 %v1208_v1 }
 0x2cf   :  { %1028 = vmatpush3.msra.mxu0 %v1292_v7 }
 0x2d0   :  { %1029 = vmatprep.subr.mxu0 %v1208_v1 }
 0x2d1   :  { %1030 = vmatpush3.msra.mxu0 %v1299_v8 }
 0x2d2   :  { %1034 = vmatprep.subr.mxu0 %v1208_v1 }
 0x382   :  { %v227_v38 = vpop.f32.mrf.mxu0 }
 0x383   :  { %v228_v39 = vadd.f32 %v227_v38, %v1416_v37 }
 0x384   :  { %v979_v40 = vpop.f32.mrf.mxu0 }
 0x385   :  { %231 = vmax.xlane.f32.xlu0 %v228_v39 }
 0x40e   :  { %v232_v51 = vpop.xlane.xlu0 %231 }
 0x40f   :  { %v233_v52 = vsub.f32 %v228_v39, %v232_v51 }
 0x411   :  { %v234_v53 = vmul.f32 1.442695, %v233_v52 }
 0x413   :  { %1158 = vpow2.f32 %v234_v53 }
 0x420   :  { %v1159_v54 = vpop.eup %1158 }
 0x421   :  { %236 = vadd.xlane.f32.xlu1 %v1159_v54  ;;  %1013 = vmatmul.mubr.f32.vlgmr.msra.gmra.mxu1 %v1159_v54 }
 0x422   :  { %1081 = vmatpush3.msra.mxu1 %v1246_v0  ;;  %1096 = vmatprep.mubr.msk.f32.mxu1 %vm1209_vm0, %v1208_v1 }
 0x423   :  { %1082 = vmatprep.subr.mxu1 %v1208_v1 }
 0x424   :  { %1083 = vmatpush3.msra.mxu1 %v1252_v2 }
 0x425   :  { %1084 = vmatprep.subr.mxu1 %v1208_v1 }
 0x426   :  { %1085 = vmatpush3.msra.mxu1 %v1262_v3 }
 0x427   :  { %1086 = vmatprep.subr.mxu1 %v1208_v1 }
 0x428   :  { %1087 = vmatpush3.msra.mxu1 %v1271_v4 }
 0x429   :  { %1088 = vmatprep.subr.mxu1 %v1208_v1 }
 0x42a   :  { %1089 = vmatpush3.msra.mxu1 %v1278_v5 }
 0x42b   :  { %1090 = vmatprep.subr.mxu1 %v1208_v1 }
 0x42c   :  { %1091 = vmatpush3.msra.mxu1 %v1285_v6 }
 0x42d   :  { %1092 = vmatprep.subr.mxu1 %v1208_v1 }
 0x42e   :  { %1093 = vmatpush3.msra.mxu1 %v1292_v7 }
 0x42f   :  { %1094 = vmatprep.subr.mxu1 %v1208_v1 }
 0x430   :  { %1095 = vmatpush3.msra.mxu1 %v1299_v8 }
 0x431   :  { %1099 = vmatprep.subr.mxu1 %v1208_v1 }
 0x4aa   :  { %v237_v55 = vpop.xlane.xlu1 %236 }
 0x4ab   :  { %v308_v56 = vadd.f32 1e-16, %v237_v55 }
 0x4ad   :  { %1160 = vrcp.f32 %v308_v56 }
 0x4ba   :  { %v1161_v57 = vpop.eup %1160 }
 0x4e1   :  { %v304_v58 = vpop.f32.mrf.mxu1 }
 0x4e2   :  { %v310_v59 = vmul.f32 %v1161_v57, %v304_v58 }
 0x4e3   :  { %v1014_v60 = vpop.f32.mrf.mxu1 }
 0x4e4   :  { %313 = vrot.lane.b32.xlu0 %v310_v59, %s1211_s11 }
 0x556   :  { %v314_v61 = vpop.permute.xlu0 %313 }
 0x557   :  { %v316_v62 = vsel %vm158_vm1, %v1349_v30, %v314_v61 }
 0x558   :  { %1032 = vmatmul.mubr.msk.f32.vlgmr.msra.gmra.mxu0 %vm57_vm2, %v316_v62 }
 0x559   :  { %1035 = vmatpush3.msra.mxu0 %v1322_v23  ;;  %1042 = vmatprep.mubr.msk.f32.mxu0 %vm1209_vm0, %v1208_v1 }
 0x55a   :  { %1036 = vmatprep.subr.mxu0 %v1208_v1 }
 0x55b   :  { %1037 = vmatpush3.msra.mxu0 %v1327_v24 }
 0x55c   :  { %1038 = vmatprep.subr.mxu0 %v1208_v1 }
 0x55d   :  { %1039 = vmatpush3.msra.mxu0 %v1334_v25 }
 0x55e   :  { %1040 = vmatprep.subr.mxu0 %v1208_v1 }
 0x55f   :  { %1041 = vmatpush3.msra.mxu0 %v1344_v27 }
 0x560   :  { %1045 = vmatprep.subr.mxu0 %v1208_v1 }
 0x618   :  { %v386_v63 = vpop.f32.mrf.mxu0 }
 0x619   :  { %v387_v0 = vadd.f32 %v1311_v9, %v386_v63 }
 0x61a   :  { %v1033_v2 = vpop.f32.mrf.mxu0 }
 0x61b   :  { %1162 = vtanh.f32 %v387_v0  ;;  %v852_v4 = vmul.f32 -1.442695, %v387_v0 }
 0x61d   :  { %1164 = vpow2.f32 %v852_v4 }
 0x628   :  { %v1163_v3 = vpop.eup %1162 }
 0x629   :  { %399 = vrot.lane.b32.xlu1 %v1163_v3, %s1210_s3 }
 0x62a   :  { %v1165_v5 = vpop.eup %1164 }
 0x62b   :  { %v393_v6 = vadd.f32 1.0, %v1165_v5 }
 0x62d   :  { %1166 = vrcp.f32 %v393_v6 }
 0x63a   :  { %v1167_v7 = vpop.eup %1166 }
 0x63b   :  { %v397_v11 = vmul.f32 %v1167_v7, %v1316_v22 }
 0x69b   :  { %v400_v8 = vpop.permute.xlu1 %399 }
 0x69c   :  { %v402_v10 = vmul.f32 %v1167_v7, %v400_v8 }
 0x69e   :  { %404 = vrot.lane.b32.xlu0 %v402_v10, %s1211_s11 }
 0x710   :  { %v405_v12 = vpop.permute.xlu0 %404 }
 0x711   :  { %v1525_v13 = vadd.f32 %v405_v12, %v397_v11 }
 0x713   :  { %1168 = vtanh.f32 %v1525_v13 }
 0x720   :  { %v1169_v14 = vpop.eup %1168 }
 0x721   :  { %410 = vrot.lane.b32.xlu1 %v1169_v14, %s1210_s3 }
 0x793   :  { %v411_v15 = vpop.permute.xlu1 %410 }
 0x794   :  { %v413_v16 = vmul.f32 %v1167_v7, %v411_v15 }
 0x796   :  { %415 = vrot.lane.b32.xlu0 %v413_v16, %s1211_s11 }
 0x808   :  { %v416_v17 = vpop.permute.xlu0 %415 }
 0x809   :  { %1043 = vmatmul.mubr.msk.f32.vlgmr.msra.gmra.mxu0 %vm158_vm1, %v416_v17 }
 0x80a   :  { %1046 = vmatpush3.msra.mxu0 %v1374_v31  ;;  %1077 = vmatprep.mubr.msk.f32.mxu0 %vm1209_vm0, %v1208_v1 }
 0x80b   :  { %1047 = vmatprep.subr.mxu0 %v1208_v1 }
 0x80c   :  { %1048 = vmatpush3.msra.mxu0 %v1379_v32 }
 0x80d   :  { %1049 = vmatprep.subr.mxu0 %v1208_v1 }
 0x80e   :  { %1050 = vmatpush3.msra.mxu0 %v1386_v33 }
 0x80f   :  { %1051 = vmatprep.subr.mxu0 %v1208_v1 }
 0x810   :  { %1052 = vmatpush3.msra.mxu0 %v1393_v34 }
 0x811   :  { %1053 = vmatprep.subr.mxu0 %v1208_v1 }
 0x812   :  { %1054 = vmatpush3.msra.mxu0 %v1400_v35 }
 0x813   :  { %1055 = vmatprep.subr.mxu0 %v1208_v1 }
 0x814   :  { %1056 = vmatpush3.msra.mxu0 %v1407_v36 }
 0x815   :  { %1057 = vmatprep.subr.mxu0 %v1208_v1 }
 0x816   :  { %1058 = vmatpush3.msra.mxu0 %v1422_v41 }
 0x817   :  { %1059 = vmatprep.subr.mxu0 %v1208_v1 }
 0x818   :  { %1060 = vmatpush3.msra.mxu0 %v1429_v42 }
 0x819   :  { %1061 = vmatprep.subr.mxu0 %v1208_v1 }
 0x81a   :  { %1062 = vmatpush3.msra.mxu0 %v1436_v43 }
 0x81b   :  { %1063 = vmatprep.subr.mxu0 %v1208_v1 }
 0x81c   :  { %1064 = vmatpush3.msra.mxu0 %v1443_v44 }
 0x81d   :  { %1065 = vmatprep.subr.mxu0 %v1208_v1 }
 0x81e   :  { %1066 = vmatpush3.msra.mxu0 %v1448_v45 }
 0x81f   :  { %1067 = vmatprep.subr.mxu0 %v1208_v1 }
 0x820   :  { %1068 = vmatpush3.msra.mxu0 %v1455_v46 }
 0x821   :  { %1069 = vmatprep.subr.mxu0 %v1208_v1 }
 0x822   :  { %1070 = vmatpush3.msra.mxu0 %v1462_v47 }
 0x823   :  { %1071 = vmatprep.subr.mxu0 %v1208_v1 }
 0x824   :  { %1072 = vmatpush3.msra.mxu0 %v1469_v48 }
 0x825   :  { %1073 = vmatprep.subr.mxu0 %v1208_v1 }
 0x826   :  { %1074 = vmatpush3.msra.mxu0 %v1476_v49 }
 0x827   :  { %1075 = vmatprep.subr.mxu0 %v1208_v1 }
 0x828   :  { %1076 = vmatpush3.msra.mxu0 %v1483_v50 }
 0x8c9   :  { %v485_v18 = vpop.f32.mrf.mxu0 }
 0x8ca   :  { %v486_v19 = vadd.f32 %v485_v18, %v1416_v37 }
 0x8cb   :  { %v1044_v20 = vpop.f32.mrf.mxu0 }
 0x8cc   :  { %489 = vmax.xlane.f32.xlu1 %v486_v19 }
 0x955   :  { %v490_v21 = vpop.xlane.xlu1 %489 }
 0x956   :  { %v491_v22 = vsub.f32 %v486_v19, %v490_v21 }
 0x958   :  { %v492_v26 = vmul.f32 1.442695, %v491_v22 }
 0x95a   :  { %1170 = vpow2.f32 %v492_v26 }
 0x967   :  { %v1171_v28 = vpop.eup %1170 }
 0x968   :  { %494 = vadd.xlane.f32.xlu0 %v1171_v28  ;;  %1078 = vmatmul.mubr.f32.vlgmr.msra.gmra.mxu0 %v1171_v28 }
 0x9f1   :  { %v495_v29 = vpop.xlane.xlu0 %494 }
 0x9f2   :  { %v566_v30 = vadd.f32 1e-16, %v495_v29 }
 0x9f4   :  { %1172 = vrcp.f32 %v566_v30 }
 0xa01   :  { %v1173_v38 = vpop.eup %1172 }
 0xa28   :  { %v562_v39 = vpop.f32.mrf.mxu0 }
 0xa29   :  { %v568_v40 = vmul.f32 %v1173_v38, %v562_v39 }
 0xa2a   :  { %v1079_v51 = vpop.f32.mrf.mxu0 }
 0xa2b   :  { %571 = vrot.lane.b32.xlu0 %v568_v40, %s1211_s11 }
 0xa9d   :  { %v572_v52 = vpop.permute.xlu0 %571 }
 0xa9e   :  { %v574_v53 = vsel %vm158_vm1, %v416_v17, %v572_v52 }
 0xa9f   :  { %1097 = vmatmul.mubr.msk.f32.vlgmr.msra.gmra.mxu1 %vm57_vm2, %v574_v53 }
 0xaa0   :  { %1100 = vmatpush3.msra.mxu1 %v1322_v23  ;;  %1107 = vmatprep.mubr.msk.f32.mxu1 %vm1209_vm0, %v1208_v1 }
 0xaa1   :  { %1101 = vmatprep.subr.mxu1 %v1208_v1 }
 0xaa2   :  { %1102 = vmatpush3.msra.mxu1 %v1327_v24 }
 0xaa3   :  { %1103 = vmatprep.subr.mxu1 %v1208_v1 }
 0xaa4   :  { %1104 = vmatpush3.msra.mxu1 %v1334_v25 }
 0xaa5   :  { %1105 = vmatprep.subr.mxu1 %v1208_v1 }
 0xaa6   :  { %1106 = vmatpush3.msra.mxu1 %v1344_v27 }
 0xaa7   :  { %1110 = vmatprep.subr.mxu1 %v1208_v1 }
 0xb5f   :  { %v644_v54 = vpop.f32.mrf.mxu1 }
 0xb60   :  { %v645_v23 = vadd.f32 %v1311_v9, %v644_v54 }
 0xb61   :  { %v1098_v55 = vpop.f32.mrf.mxu1 }
 0xb62   :  { %1174 = vtanh.f32 %v645_v23  ;;  %v855_v57 = vmul.f32 -1.442695, %v645_v23 }
 0xb64   :  { %1176 = vpow2.f32 %v855_v57 }
 0xb6f   :  { %v1175_v56 = vpop.eup %1174 }
 0xb70   :  { %657 = vrot.lane.b32.xlu1 %v1175_v56, %s1210_s3 }
 0xb71   :  { %v1177_v24 = vpop.eup %1176 }
 0xb72   :  { %v651_v58 = vadd.f32 1.0, %v1177_v24 }
 0xb74   :  { %1178 = vrcp.f32 %v651_v58 }
 0xb81   :  { %v1179_v25 = vpop.eup %1178 }
 0xb82   :  { %v655_v27 = vmul.f32 %v1179_v25, %v1525_v13 }
 0xbe2   :  { %v658_v59 = vpop.permute.xlu1 %657 }
 0xbe3   :  { %v660_v60 = vmul.f32 %v1179_v25, %v658_v59 }
 0xbe5   :  { %662 = vrot.lane.b32.xlu1 %v660_v60, %s1211_s11 }
 0xc57   :  { %v663_v61 = vpop.permute.xlu1 %662 }
 0xc58   :  { %v665_v62 = vadd.f32 %v663_v61, %v655_v27 }
 0xc5a   :  { %1180 = vtanh.f32 %v665_v62 }
 0xc67   :  { %v1181_v9 = vpop.eup %1180 }
 0xc68   :  { %668 = vrot.lane.b32.xlu0 %v1181_v9, %s1210_s3  ;;  %s840_s3 = sshll.u32 %s1212_s0, 4  ;;  %s841_s3 = int_to_ptr.vmem [resolvable:$true] %s840_s3 }
 0xc69   :  { %s1186_s25 = scalar_lea.vmem %s841_s3, 128  ;;  %p1191_p1 = scmp.lt.s32.totalorder %s841_s3, %s841_s3 }
 0xc6a   :  { %p1187_p0 = scmp.ne.s32.totalorder %s841_s3, %s1186_s25  ;;  %p1192_p2 = scmp.lt.s32.totalorder %s1186_s25, %s1186_s25 }
 0xc6c   :  { %p1193_p3 = por %p1192_p2, %p1191_p1 }
 0xc6e   :  { %p1194_p4 = pnand %p1193_p3, %p1187_p0 }
 0xcda   :  { %v669_v63 = vpop.permute.xlu0 %668 }
 0xcdb   :  { %v671_v0 = vmul.f32 %v1179_v25, %v669_v63 }
 0xcdd   :  { %673 = vrot.lane.b32.xlu1 %v671_v0, %s1211_s11 }
 0xd4f   :  { %v674_v2 = vpop.permute.xlu1 %673 }
 0xd50   :  { %1108 = vmatmul.mubr.msk.f32.vlgmr.msra.gmra.mxu1 %vm158_vm1, %v674_v2 }
 0xd51   :  { %1111 = vmatpush3.msra.mxu1 %v1374_v31  ;;  %1142 = vmatprep.mubr.msk.f32.mxu1 %vm1209_vm0, %v1208_v1 }
 0xd52   :  { %1112 = vmatprep.subr.mxu1 %v1208_v1 }
 0xd53   :  { %1113 = vmatpush3.msra.mxu1 %v1379_v32 }
 0xd54   :  { %1114 = vmatprep.subr.mxu1 %v1208_v1 }
 0xd55   :  { %1115 = vmatpush3.msra.mxu1 %v1386_v33 }
 0xd56   :  { %1116 = vmatprep.subr.mxu1 %v1208_v1 }
 0xd57   :  { %1117 = vmatpush3.msra.mxu1 %v1393_v34 }
 0xd58   :  { %1118 = vmatprep.subr.mxu1 %v1208_v1 }
 0xd59   :  { %1119 = vmatpush3.msra.mxu1 %v1400_v35 }
 0xd5a   :  { %1120 = vmatprep.subr.mxu1 %v1208_v1 }
 0xd5b   :  { %1121 = vmatpush3.msra.mxu1 %v1407_v36 }
 0xd5c   :  { %1122 = vmatprep.subr.mxu1 %v1208_v1 }
 0xd5d   :  { %1123 = vmatpush3.msra.mxu1 %v1422_v41 }
 0xd5e   :  { %1124 = vmatprep.subr.mxu1 %v1208_v1 }
 0xd5f   :  { %1125 = vmatpush3.msra.mxu1 %v1429_v42 }
 0xd60   :  { %1126 = vmatprep.subr.mxu1 %v1208_v1 }
 0xd61   :  { %1127 = vmatpush3.msra.mxu1 %v1436_v43 }
 0xd62   :  { %1128 = vmatprep.subr.mxu1 %v1208_v1 }
 0xd63   :  { %1129 = vmatpush3.msra.mxu1 %v1443_v44 }
 0xd64   :  { %1130 = vmatprep.subr.mxu1 %v1208_v1 }
 0xd65   :  { %1131 = vmatpush3.msra.mxu1 %v1448_v45 }
 0xd66   :  { %1132 = vmatprep.subr.mxu1 %v1208_v1 }
 0xd67   :  { %1133 = vmatpush3.msra.mxu1 %v1455_v46 }
 0xd68   :  { %1134 = vmatprep.subr.mxu1 %v1208_v1 }
 0xd69   :  { %1135 = vmatpush3.msra.mxu1 %v1462_v47 }
 0xd6a   :  { %1136 = vmatprep.subr.mxu1 %v1208_v1 }
 0xd6b   :  { %1137 = vmatpush3.msra.mxu1 %v1469_v48 }
 0xd6c   :  { %1138 = vmatprep.subr.mxu1 %v1208_v1 }
 0xd6d   :  { %1139 = vmatpush3.msra.mxu1 %v1476_v49 }
 0xd6e   :  { %1140 = vmatprep.subr.mxu1 %v1208_v1 }
 0xd6f   :  { %1141 = vmatpush3.msra.mxu1 %v1483_v50 }
 0xe10   :  { %v743_v31 = vpop.f32.mrf.mxu1 }
 0xe11   :  { %v744_v32 = vadd.f32 %v743_v31, %v1416_v37 }
 0xe12   :  { %v1109_v33 = vpop.f32.mrf.mxu1 }
 0xe13   :  { %747 = vmax.xlane.f32.xlu0 %v744_v32 }
 0xe9c   :  { %v748_v34 = vpop.xlane.xlu0 %747 }
 0xe9d   :  { %v749_v35 = vsub.f32 %v744_v32, %v748_v34 }
 0xe9f   :  { %v750_v36 = vmul.f32 1.442695, %v749_v35 }
 0xea1   :  { %1182 = vpow2.f32 %v750_v36 }
 0xeae   :  { %v1183_v41 = vpop.eup %1182 }
 0xeaf   :  { %752 = vadd.xlane.f32.xlu1 %v1183_v41  ;;  %1143 = vmatmul.mubr.f32.vlgmr.msra.gmra.mxu1 %v1183_v41 }
 0xf38   :  { %v753_v42 = vpop.xlane.xlu1 %752 }
 0xf39   :  { %v824_v43 = vadd.f32 1e-16, %v753_v42 }
 0xf3b   :  { %1184 = vrcp.f32 %v824_v43 }
 0xf48   :  { %v1185_v44 = vpop.eup %1184 }
 0xf6f   :  { %v820_v45 = vpop.f32.mrf.mxu1 }
 0xf70   :  { %v826_v1 = vmul.f32 %v1185_v44, %v820_v45 }
 0xf71   :  { %v1144_v46 = vpop.f32.mrf.mxu1 }
 0xf72   :  { %829 = vrot.lane.b32.xlu0 %v826_v1, %s1211_s11 }
 0xfe4   :  { %v830_v37 = vpop.permute.xlu0 %829 }
 0xfe5   :  { %v832_v47 = vsel %vm158_vm1, %v674_v2, %v830_v37 }
 0xfe6   :  { %833 = vst.msk [vmem:[#allocation2] sm:$0xff] %vm57_vm2, %v832_v47 }
 0xfe7   :  { %1197 = shalt.err (!%p1194_p4)
}
 0xfe8   :  { %843 = dma.vmem_to_hbm [thread:$0]  %s841_s3, 128, %s1630_s5, [#allocation3]  }
 0xfe9   :  { %1206 = dma.done.wait [#allocation3], 128  }
 0xfea   :  { %1207 = vsyncadd [#allocation3], 4294967168 }
 0xfeb   :  { %847 = vsyncpa [#allocation3], 1 }

</bundles_post_ra>
